<compile_context>
chip_gen: v7x
topology: tpu7x:2x2x1
jax: 0.10.0
libtpu: 0.0.40
codegen_flags: <defaults>
</compile_context>

<pallas_src>
import jax
import jax.numpy as jnp
from jax.experimental import pallas as pl
from jax.experimental.pallas import tpu as pltpu


# ----------------------------- tiling helpers ------------------------------

def _vmem_capacity_bytes():
    """Physical per-core VMEM; conservative 64 MiB if the query is unavailable."""
    try:
        info = pltpu.get_tpu_info()
        cap = getattr(info, "vmem_capacity_bytes", None)
        if cap:
            return int(cap)
    except Exception:
        pass
    return 64 * 1024 * 1024


def _default_block_bytes():
    # v5e/v6e (128 MiB VMEM): bigger blocks amortize the ~0.35us/step overhead.
    # v7x (64 MiB VMEM): keep blocks smaller to preserve double-buffer headroom.
    if _vmem_capacity_bytes() >= 96 * 1024 * 1024:
        return 6 * 1024 * 1024
    return 3 * 1024 * 1024


def _legal_row_tiles(R):
    """Legal sublane tiles over the flattened N*C axis: multiples of 8 dividing R, plus R."""
    cands = [d for d in range(8, R, 8) if R % d == 0]
    cands.append(R)
    return cands


def _pick_row_tile(R, row_elems, itemsize, budget, pack):
    """Largest legal row tile fitting `budget`, preferring dtype-pack alignment
    and keeping >= 2-4 grid steps alive (megacore / pipelining)."""
    row_bytes = max(1, row_elems * itemsize)
    cands = _legal_row_tiles(R)
    fits = [d for d in cands if d * row_bytes <= budget] or [min(cands)]
    aligned = [d for d in fits if d % pack == 0] or fits
    for min_steps in (4, 2, 1):
        ok = [d for d in aligned if R // d >= min_steps]
        if ok:
            return max(ok)
    return max(aligned)


def _pick_hw_tile(HW, itemsize, budget, min_rows):
    """Largest multiple-of-128 proper divisor of HW whose (min_rows, thw) block fits."""
    best = None
    for t in range(128, HW, 128):
        if HW % t == 0 and min_rows * t * itemsize <= budget:
            best = t
    return best


def _vmem_limit_bytes(block_bytes, tr):
    """Scoped-VMEM request: double-buffered in/out blocks + lane-padded (tr,1)
    f32 side operands (up to 3, double-buffered) + compiler headroom."""
    needed = 4 * block_bytes + 3 * 2 * tr * 128 * 4 + (2 << 20)
    cap = (40 << 20) if _vmem_capacity_bytes() <= (64 << 20) else (96 << 20)
    limit = max(32 << 20, needed)
    if needed <= cap:
        limit = min(limit, cap)
    return limit


# -------------------------------- kernels -----------------------------------

def _gap_onepass_kernel(x_ref, fd_ref, fh_ref, o_ref):
    # x_ref: (tr, HW) lane-dense block; fd/fh: (tr, 1) f32 per-row scales.
    x = x_ref[...]
    # f32 is the accumulation dtype only; no f32 copy of the block.
    mean = jnp.mean(x, axis=-1, keepdims=True, dtype=jnp.float32).astype(x.dtype)
    fd = fd_ref[...].astype(x.dtype)
    fh = fh_ref[...].astype(x.dtype)
    o_ref[...] = (mean * fd + (x - mean) * (fh + 1.0)).astype(o_ref.dtype)


def _gap_onepass(x2, fd, fh, tr, vmem_limit):
    R, HW = x2.shape
    return pl.pallas_call(
        _gap_onepass_kernel,
        out_shape=jax.ShapeDtypeStruct((R, HW), x2.dtype),
        grid_spec=pltpu.PrefetchScalarGridSpec(
            num_scalar_prefetch=0,
            grid=(R // tr,),
            in_specs=[
                pl.BlockSpec((tr, HW), lambda r: (r, 0)),
                pl.BlockSpec((tr, 1), lambda r: (r, 0)),
                pl.BlockSpec((tr, 1), lambda r: (r, 0)),
            ],
            out_specs=pl.BlockSpec((tr, HW), lambda r: (r, 0)),
        ),
        compiler_params=pltpu.CompilerParams(
            dimension_semantics=("parallel",),
            vmem_limit_bytes=vmem_limit,
        ),
    )(x2, fd, fh)


def _make_mean_kernel(inv_hw):
    def mean_kernel(x_ref, m_ref):
        h = pl.program_id(1)

        @pl.when(h == 0)
        def _init():
            m_ref[...] = jnp.zeros_like(m_ref)

        # f32 partial-sum accumulation into the resident (tr, 1) output block.
        m_ref[...] += jnp.sum(x_ref[...], axis=-1, keepdims=True, dtype=jnp.float32)

        @pl.when(h == pl.num_programs(1) - 1)
        def _finalize():
            m_ref[...] = m_ref[...] * inv_hw

    return mean_kernel


def _gap_apply_kernel(x_ref, m_ref, fd_ref, fh_ref, o_ref):
    x = x_ref[...]
    mean = m_ref[...].astype(x.dtype)
    fd = fd_ref[...].astype(x.dtype)
    fh = fh_ref[...].astype(x.dtype)
    o_ref[...] = (mean * fd + (x - mean) * (fh + 1.0)).astype(o_ref.dtype)


def _gap_twopass(x2, fd, fh, tr, thw, vmem_limit):
    R, HW = x2.shape
    n_r, n_h = R // tr, HW // thw

    means = pl.pallas_call(
        _make_mean_kernel(1.0 / HW),
        out_shape=jax.ShapeDtypeStruct((R, 1), jnp.float32),
        grid_spec=pltpu.PrefetchScalarGridSpec(
            num_scalar_prefetch=0,
            grid=(n_r, n_h),
            in_specs=[pl.BlockSpec((tr, thw), lambda r, h: (r, h))],
            out_specs=pl.BlockSpec((tr, 1), lambda r, h: (r, 0)),
        ),
        compiler_params=pltpu.CompilerParams(
            dimension_semantics=("parallel", "arbitrary"),
            vmem_limit_bytes=vmem_limit,
        ),
    )(x2)

    return pl.pallas_call(
        _gap_apply_kernel,
        out_shape=jax.ShapeDtypeStruct((R, HW), x2.dtype),
        grid_spec=pltpu.PrefetchScalarGridSpec(
            num_scalar_prefetch=0,
            grid=(n_r, n_h),
            in_specs=[
                pl.BlockSpec((tr, thw), lambda r, h: (r, h)),
                # Block index constant over the inner HW axis -> stays resident,
                # no per-step re-DMA of the small operands.
                pl.BlockSpec((tr, 1), lambda r, h: (r, 0)),
                pl.BlockSpec((tr, 1), lambda r, h: (r, 0)),
                pl.BlockSpec((tr, 1), lambda r, h: (r, 0)),
            ],
            out_specs=pl.BlockSpec((tr, thw), lambda r, h: (r, h)),
        ),
        compiler_params=pltpu.CompilerParams(
            dimension_semantics=("parallel", "parallel"),
            vmem_limit_bytes=vmem_limit,
        ),
    )(x2, means, fd, fh)


# -------------------------------- wrapper -----------------------------------

def gap_forward(x, fscale_d, fscale_h, *, target_block_bytes=None):
    """x: (N, C, H, W); fscale_d, fscale_h: (C,). Returns (N, C, H, W)."""
    N, C, H, W = x.shape
    HW = H * W
    R = N * C
    itemsize = jnp.dtype(x.dtype).itemsize
    pack = max(8, 32 // itemsize)        # packed sublane count: 8 f32 / 16 bf16 / 32 int8

    if target_block_bytes is None:
        target_block_bytes = _default_block_bytes()

    # Lane-dense 2-D view: sublanes = N*C rows, lanes = spatial.
    x2 = x.reshape(R, HW)
    fd = jnp.tile(fscale_d.astype(jnp.float32), N).reshape(R, 1)   # row r -> channel r % C
    fh = jnp.tile(fscale_h.astype(jnp.float32), N).reshape(R, 1)

    min_tr = min(_legal_row_tiles(R))

    if min_tr * HW * itemsize <= target_block_bytes:
        # One-pass path: a full spatial row fits in one block.
        tr = _pick_row_tile(R, HW, itemsize, target_block_bytes, pack)
        vmem_limit = _vmem_limit_bytes(tr * HW * itemsize, tr)
        out2 = _gap_onepass(x2, fd, fh, tr, vmem_limit)
    else:
        thw = _pick_hw_tile(HW, itemsize, target_block_bytes, min_tr)
        if thw is None:
            # TODO(synk): HW has no multiple-of-128 tile fitting the budget; fall
            # back to a full-row block per step (may exceed the per-gen VMEM cap).
            tr = min_tr
            vmem_limit = _vmem_limit_bytes(tr * HW * itemsize, tr)
            out2 = _gap_onepass(x2, fd, fh, tr, vmem_limit)
        else:
            # Two-pass path: HW-tiled f32 partial-sum reduce, then apply.
            tr = _pick_row_tile(R, thw, itemsize, target_block_bytes, pack)
            vmem_limit = _vmem_limit_bytes(tr * thw * itemsize, tr)
            out2 = _gap_twopass(x2, fd, fh, tr, thw, vmem_limit)

    return out2.reshape(N, C, H, W)


def gap_reference(x, fscale_d, fscale_h):
    x_d = jnp.mean(x, axis=(2, 3), keepdims=True)
    x_h = (x - x_d) * (fscale_h[None, :, None, None] + 1.0)
    x_d = x_d * fscale_d[None, :, None, None]
    return x_d + x_h


if __name__ == "__main__":
    key = jax.random.PRNGKey(0)

    # (N, C, H, W, dtype, atol, rtol, forced block budget)
    cases = [
        (2, 4, 16, 16, jnp.float32, 1e-5, 1e-5, None),       # small, one-pass
        (2, 32, 16, 16, jnp.float32, 1e-5, 1e-5, None),      # multi row-tile grid
        (2, 16, 16, 16, jnp.bfloat16, 5e-2, 5e-2, None),     # bf16 epilogue (looser tol)
        (1, 8, 32, 32, jnp.float32, 1e-5, 1e-5, 16 * 1024),  # forces HW-tiled two-pass path
    ]

    for i, (N, C, H, W, dtype, atol, rtol, tbb) in enumerate(cases):
        kx, kd, kh = jax.random.split(jax.random.fold_in(key, i), 3)
        x = jax.random.normal(kx, (N, C, H, W), dtype=jnp.float32).astype(dtype)
        # The PyTorch module initializes both scales to zeros; use small non-zero
        # values so the per-channel scaling path is actually exercised.
        fscale_d = 0.1 * jax.random.normal(kd, (C,), dtype=jnp.float32)
        fscale_h = 0.1 * jax.random.normal(kh, (C,), dtype=jnp.float32)

        out = gap_forward(x, fscale_d, fscale_h, target_block_bytes=tbb)
        out = jax.block_until_ready(out)

        ref = gap_reference(x.astype(jnp.float32), fscale_d, fscale_h)
        assert out.shape == (N, C, H, W)
        assert jnp.allclose(out.astype(jnp.float32), ref, atol=atol, rtol=rtol), (
            f"mismatch vs reference in case {i}")

    print("KERNEL_OK")
</pallas_src>

<mosaic_0001>
module attributes {stable_mosaic.version = 11 : i64} {
  func.func @_gap_onepass_kernel(%arg0: i32, %arg1: memref<8x256xf32, #tpu.memory_space<vmem>>, %arg2: memref<8x1xf32, #tpu.memory_space<vmem>>, %arg3: memref<8x1xf32, #tpu.memory_space<vmem>>, %arg4: memref<8x256xf32, #tpu.memory_space<vmem>>) attributes {dimension_semantics = [#tpu.dimension_semantics<parallel>], iteration_bounds = array<i64: 1>, scalar_prefetch = 0 : i64, scratch_operands = 0 : i64, tpu.core_type = #tpu.core_type<tc>, window_params = [{transform_indices = @transform_0, window_bounds = array<i64: 8, 256>}, {transform_indices = @transform_1, window_bounds = array<i64: 8, 1>}, {transform_indices = @transform_2, window_bounds = array<i64: 8, 1>}, {transform_indices = @transform_3, window_bounds = array<i64: 8, 256>}]} {
    %c0 = arith.constant 0 : index
    %c0_0 = arith.constant 0 : index
    %0 = vector.load %arg1[%c0, %c0_0] : memref<8x256xf32, #tpu.memory_space<vmem>>, vector<8x256xf32>
    %cst = arith.constant dense<0.000000e+00> : vector<8xf32>
    %1 = vector.multi_reduction <add>, %0, %cst [1] : vector<8x256xf32> to vector<8xf32>
    %2 = vector.shape_cast %1 : vector<8xf32> to vector<8x1xf32>
    %cst_1 = arith.constant 2.560000e+02 : f32
    %3 = vector.broadcast %cst_1 : f32 to vector<8x1xf32>
    %4 = arith.divf %2, %3 : vector<8x1xf32>
    %c0_2 = arith.constant 0 : index
    %c0_3 = arith.constant 0 : index
    %5 = vector.load %arg2[%c0_2, %c0_3] : memref<8x1xf32, #tpu.memory_space<vmem>>, vector<8x1xf32>
    %c0_4 = arith.constant 0 : index
    %c0_5 = arith.constant 0 : index
    %6 = vector.load %arg3[%c0_4, %c0_5] : memref<8x1xf32, #tpu.memory_space<vmem>>, vector<8x1xf32>
    %7 = arith.mulf %4, %5 : vector<8x1xf32>
    %8 = vector.broadcast %4 : vector<8x1xf32> to vector<8x256xf32>
    %9 = arith.subf %0, %8 : vector<8x256xf32>
    %cst_6 = arith.constant 1.000000e+00 : f32
    %10 = vector.broadcast %cst_6 : f32 to vector<8x1xf32>
    %11 = arith.addf %6, %10 : vector<8x1xf32>
    %12 = vector.broadcast %11 : vector<8x1xf32> to vector<8x256xf32>
    %13 = arith.mulf %9, %12 : vector<8x256xf32>
    %14 = vector.broadcast %7 : vector<8x1xf32> to vector<8x256xf32>
    %15 = arith.addf %14, %13 : vector<8x256xf32>
    %c0_7 = arith.constant 0 : index
    %c0_8 = arith.constant 0 : index
    %16 = vector.load %arg4[%c0_7, %c0_8] : memref<8x256xf32, #tpu.memory_space<vmem>>, vector<8x256xf32>
    tpu.vector_store %arg4[%c0_7, %c0_8], %15 {strides = array<i32>} : memref<8x256xf32, #tpu.memory_space<vmem>>, vector<8x256xf32>,
    return
  }
  func.func @transform_0(%arg0: i32) -> (i32, i32) {
    %c0_i32 = arith.constant 0 : i32
    %c0_i32_0 = arith.constant 0 : i32
    return %arg0, %c0_i32 : i32, i32
  }
  func.func @transform_1(%arg0: i32) -> (i32, i32) {
    %c0_i32 = arith.constant 0 : i32
    %c0_i32_0 = arith.constant 0 : i32
    return %arg0, %c0_i32 : i32, i32
  }
  func.func @transform_2(%arg0: i32) -> (i32, i32) {
    %c0_i32 = arith.constant 0 : i32
    %c0_i32_0 = arith.constant 0 : i32
    return %arg0, %c0_i32 : i32, i32
  }
  func.func @transform_3(%arg0: i32) -> (i32, i32) {
    %c0_i32 = arith.constant 0 : i32
    %c0_i32_0 = arith.constant 0 : i32
    return %arg0, %c0_i32 : i32, i32
  }
}

</mosaic_0001>

<bundles_post_ra>
// kernel: tpu_custom_call.1
= control target key start
LH: loop header
LB: loop body
LE: loop exit
PB: predicated region body
PF: predicated region fallthrough
CT: control target
= control target key end

     0   :  { %v86_v3 = vmov 0   ;;  %s132_s0 = inlined_call_operand.vmem [shape: f32[8,256], index: 0, kind: input, shape index: {}]   ;;  %s133_s1 = inlined_call_operand.vmem [shape: f32[8,1], index: 1, kind: input, shape index: {}]   ;;  %s134_s2 = inlined_call_operand.vmem [shape: f32[8,1], index: 2, kind: input, shape index: {}]   ;;  %s135_s3 = inlined_call_operand.hbm [shape: f32[8,256], index: 3, kind: output, shape index: {}]  }
   0x1   :  { %v15_v0 = vld [vmem:[%s132_s0] sm:$0xff]  ;;  %v16_v1 = vld [vmem:[%s132_s0 + $0x8] sm:$0xff]  ;;  %60 = vset.pattern.permute.xlu0 %v86_v3  ;;  %61 = vset.pattern.permute.xlu1 %v86_v3 }
   0x2   :  { %v17_v2 = vadd.f32 %v16_v1, %v15_v0 }
   0x3   :  { %8 = vsyncpa [#allocation3], 0  ;;  %v23_v4 = vld [vmem:[%s134_s2] sm:$0xff]  ;;  %s87_s0 = smov [#allocation2]  }
   0x4   :  { %18 = vadd.xlane.f32.xlu0 %v17_v2  ;;  %v27_v5 = vadd.f32 1.0, %v23_v4  ;;  %v22_v7 = vld [vmem:[%s133_s1] sm:$0xff]  ;;  %s50_s20 = sshll.u32 %s87_s0, 4  ;;  %s51_s20 = int_to_ptr.vmem [resolvable:$true] %s50_s20 }
   0x5   :  { %s62_s2 = scalar_lea.vmem %s51_s20, 256  ;;  %p67_p1 = scmp.lt.s32.totalorder %s51_s20, %s51_s20 }
   0x6   :  { %p63_p0 = scmp.ne.s32.totalorder %s51_s20, %s62_s2  ;;  %p68_p2 = scmp.lt.s32.totalorder %s62_s2, %s62_s2 }
   0x8   :  { %p69_p3 = por %p68_p2, %p67_p1 }
   0xa   :  { %p70_p4 = pnand %p69_p3, %p63_p0 }
  0x1a   :  { %30 = vperm.xlu0 %60, %v27_v5  }
  0x91   :  { %v19_v6 = vpop.xlane.xlu0 %18 }
  0x92   :  { %v21_v8 = vmul.f32 0.00390625, %v19_v6 }
  0x94   :  { %v24_v9 = vmul.f32 %v22_v7, %v21_v8  ;;  %v25_v11 = vsub.f32 %v15_v0, %v21_v8  ;;  %v26_v12 = vsub.f32 %v16_v1, %v21_v8 }
  0x96   :  { %37 = vperm.xlu1 %61, %v24_v9  }
  0x99   :  { %v31_v10 = vpop.permute.xlu0 %30 }
  0x9a   :  { %v33_v13 = vmul.f32 %v31_v10, %v25_v11  ;;  %v34_v14 = vmul.f32 %v31_v10, %v26_v12 }
 0x115   :  { %v38_v15 = vpop.permute.xlu1 %37 }
 0x116   :  { %v40_v16 = vadd.f32 %v38_v15, %v33_v13  ;;  %v41_v17 = vadd.f32 %v38_v15, %v34_v14 }
 0x118   :  { %42 = vst [vmem:[#allocation2] sm:$0xff] %v40_v16  ;;  %43 = vst [vmem:[#allocation2 + $0x8] sm:$0xff] %v41_v17 }
 0x119   :  { %73 = shalt.err (!%p70_p4)
}
 0x11a   :  { %s74_s22 = scalar_lea.hbm %s135_s3, 256 }
 0x11b   :  { %p75_p5 = scmp.ne.s32.totalorder %s135_s3, %s74_s22  ;;  %p78_p6 = scmp.lt.u32.totalorder %s74_s22, %s135_s3 }
 0x11d   :  { %p80_p7 = pnand %p78_p6, %p75_p5 }
 0x11f   :  { %83 = shalt.err (!%p80_p7)
}
 0x120   :  { %53 = dma.vmem_to_hbm [thread:$0]  %s51_s20, 256, %s135_s3, [#allocation3]  }
 0x121   :  { %84 = dma.done.wait [#allocation3], 256  }
 0x122   :  { %85 = vsyncadd [#allocation3], 4294967040 }
 0x123   :  { %57 = vsyncpa [#allocation3], 1 }

</bundles_post_ra>
